<compile_context>
chip_gen: v5e
topology: v5e:2x2
jax: 0.10.0
libtpu: 0.0.40
codegen_flags: <defaults>
</compile_context>

<pallas_src>
import functools

import jax
import jax.numpy as jnp
from jax import lax
from jax.experimental import pallas as pl
from jax.experimental.pallas import tpu as pltpu


def _round_up(n: int, m: int) -> int:
    return ((n + m - 1) // m) * m


def _normalize_kernel(x_ref, o_ref, *, power):
    x = x_ref[...]
    xf = x.astype(jnp.float32)  # accumulate in f32 for accuracy

    if power == 2:
        s = jnp.sum(xf * xf, axis=-1, keepdims=True)
        inv = lax.rsqrt(s)                      # EUP slot; frees VALU vs sqrt+divide
    elif power == 1:
        # Matches the module literally: x.pow(1).sum(1) (NOT an L1 norm — no abs).
        s = jnp.sum(xf, axis=-1, keepdims=True)
        inv = 1.0 / s
    elif isinstance(power, int) and power > 0:
        # Integer p: repeated VALU multiplies instead of per-element exp*log pow
        # (single EUP port would become the binding slot, especially on v5e).
        s = jnp.sum(lax.integer_pow(xf, power), axis=-1, keepdims=True)
        inv = jnp.power(s, -1.0 / power)        # only (rows, 1) column — negligible
    else:
        # Generic non-integer p: matches torch.pow semantics (NaN for x<0).
        s = jnp.sum(jnp.power(xf, float(power)), axis=-1, keepdims=True)
        inv = jnp.power(s, -1.0 / float(power))

    # Multiply in f32 (VALU has ample slack), cast once on the store.
    o_ref[...] = (xf * inv).astype(o_ref.dtype)


def pallas_normalize(x, power=2, block_rows=None):
    """L_p-normalize each row of x (N, D) over the feature (last) dimension.

    Equivalent to the PyTorch module's forward for a 2-D input, where
    PyTorch dim 1 is the feature dimension. No eps clamping: all-zero rows
    produce inf/NaN, exactly like the reference module.
    """
    N, D = x.shape
    itemsize = jnp.dtype(x.dtype).itemsize
    # Native sublane tile: 8 rows f32, 16 rows bf16, 32 rows int8/fp8.
    sublane = 8 * max(1, 4 // itemsize)

    if block_rows is None:
        # ~4 MiB input tiles: amortizes the ~0.35 us per-grid-step overhead and
        # sits at the measured ~86% of HBM roofline for streaming kernels.
        target_bytes = 4 << 20
        block_rows = max(sublane, target_bytes // max(D * itemsize, 1))
        block_rows = min(block_rows, 8192)
        # Keep >= ~4 grid steps for small N so both v7x TensorCores get work and
        # DMA prefetch/writeback overlaps with compute.
        min_split = _round_up(max(1, -(-N // 4)), sublane)
        block_rows = min(block_rows, max(sublane, min_split))
    block_rows = max(sublane, (block_rows // sublane) * sublane)

    grid = (pl.cdiv(N, block_rows),)  # ragged tail handled by masked boundary stores

    tile_bytes = block_rows * D * itemsize
    # in + out, double-buffered, plus slack; capped well under v7x's 64 MiB VMEM,
    # while raising v5e's 16 MiB scoped default.
    vmem_limit = int(max(32 << 20, min(48 << 20, 4 * tile_bytes + (2 << 20))))

    out = pl.pallas_call(
        functools.partial(_normalize_kernel, power=power),
        out_shape=jax.ShapeDtypeStruct((N, D), x.dtype),
        grid_spec=pltpu.PrefetchScalarGridSpec(
            num_scalar_prefetch=0,
            grid=grid,
            in_specs=[pl.BlockSpec((block_rows, D), lambda i: (i, 0))],
            out_specs=pl.BlockSpec((block_rows, D), lambda i: (i, 0)),
        ),
        compiler_params=pltpu.CompilerParams(
            # Batch axis is embarrassingly parallel -> megacore split (v7x 2 TCs).
            dimension_semantics=("parallel",),
            vmem_limit_bytes=vmem_limit,
        ),
        cost_estimate=pl.CostEstimate(
            flops=3 * N * D,
            transcendentals=N,
            bytes_accessed=2 * N * D * itemsize,
        ),
    )(x)
    return out


def _reference(x, power=2):
    norm = jnp.power(
        jnp.sum(jnp.power(x, power), axis=1, keepdims=True), 1.0 / power
    )
    return x / norm


if __name__ == "__main__":
    key = jax.random.PRNGKey(0)

    # Ragged batch (N=50, not a multiple of the block) exercises the
    # partial-final-block (masked store) path; D=256 is lane-dense.
    x = jax.random.normal(key, (50, 256), dtype=jnp.float32)
    out = jax.block_until_ready(pallas_normalize(x))
    ref = _reference(x)
    assert out.shape == x.shape
    assert jnp.allclose(out, ref, atol=1e-5, rtol=1e-5), "f32 mismatch vs reference"

    # bf16 path: ragged N=18 vs the 16-row bf16 sublane tile; scale in f32,
    # single cast on store.
    xb = jax.random.normal(jax.random.PRNGKey(1), (18, 128), dtype=jnp.bfloat16)
    outb = jax.block_until_ready(pallas_normalize(xb))
    refb = _reference(xb.astype(jnp.float32))
    assert jnp.allclose(outb.astype(jnp.float32), refb, atol=2e-2, rtol=2e-2), (
        "bf16 mismatch vs reference"
    )

    # Generic integer power (p=4) uses the repeated-multiply fast path.
    x4 = jax.random.normal(jax.random.PRNGKey(2), (24, 128), dtype=jnp.float32)
    out4 = jax.block_until_ready(pallas_normalize(x4, power=4))
    ref4 = _reference(x4, power=4)
    assert jnp.allclose(out4, ref4, atol=1e-5, rtol=1e-5), "p=4 mismatch vs reference"

    print("KERNEL_OK")
</pallas_src>

<mosaic_0001>
module attributes {stable_mosaic.version = 11 : i64} {
  func.func @_normalize_kernel(%arg0: i32, %arg1: memref<16x256xf32, #tpu.memory_space<vmem>>, %arg2: memref<16x256xf32, #tpu.memory_space<vmem>>) attributes {dimension_semantics = [#tpu.dimension_semantics<parallel>], iteration_bounds = array<i64: 4>, scalar_prefetch = 0 : i64, scratch_operands = 0 : i64, tpu.core_type = #tpu.core_type<tc>, window_params = [{transform_indices = @transform_0, window_bounds = array<i64: 16, 256>}, {transform_indices = @transform_1, window_bounds = array<i64: 16, 256>}]} {
    %c0 = arith.constant 0 : index
    %c0_0 = arith.constant 0 : index
    %0 = vector.load %arg1[%c0, %c0_0] : memref<16x256xf32, #tpu.memory_space<vmem>>, vector<16x256xf32>
    %1 = arith.mulf %0, %0 : vector<16x256xf32>
    %cst = arith.constant dense<0.000000e+00> : vector<16xf32>
    %2 = vector.multi_reduction <add>, %1, %cst [1] : vector<16x256xf32> to vector<16xf32>
    %3 = vector.shape_cast %2 : vector<16xf32> to vector<16x1xf32>
    %4 = math.rsqrt %3 : vector<16x1xf32>
    %5 = vector.broadcast %4 : vector<16x1xf32> to vector<16x256xf32>
    %6 = arith.mulf %0, %5 : vector<16x256xf32>
    %c0_1 = arith.constant 0 : index
    %c0_2 = arith.constant 0 : index
    %7 = vector.load %arg2[%c0_1, %c0_2] : memref<16x256xf32, #tpu.memory_space<vmem>>, vector<16x256xf32>
    tpu.vector_store %arg2[%c0_1, %c0_2], %6 {strides = array<i32>} : memref<16x256xf32, #tpu.memory_space<vmem>>, vector<16x256xf32>,
    return
  }
  func.func @transform_0(%arg0: i32) -> (i32, i32) {
    %c0_i32 = arith.constant 0 : i32
    %c0_i32_0 = arith.constant 0 : i32
    return %arg0, %c0_i32 : i32, i32
  }
  func.func @transform_1(%arg0: i32) -> (i32, i32) {
    %c0_i32 = arith.constant 0 : i32
    %c0_i32_0 = arith.constant 0 : i32
    return %arg0, %c0_i32 : i32, i32
  }
}

</mosaic_0001>

<bundles_post_ra>
// kernel: tpu_custom_call.1
= control target key start
LH: loop header
LB: loop body
LE: loop exit
PB: predicated region body
PF: predicated region fallthrough
CT: control target
= control target key end

     0   :  { %6 = vsyncpa [#allocation3], 0  ;;  %s685_s0 = inlined_call_operand.hbm [shape: f32[50,256], index: 0, kind: input, shape index: {}]   ;;  %s686_s1 = inlined_call_operand.hbm [shape: f32[50,256], index: 1, kind: output, shape index: {}]  }
   0x1   :  { %8 = vsyncpa [#allocation3 + $0x1], 0 }
   0x2   :  { %9 = vsyncpa [#allocation4], 0 }
   0x3   :  { %11 = vsyncpa [#allocation4 + $0x1], 0  ;;  %s511_s6 = smov 0   ;;  %s513_s7 = smov 0  }
   0x4   :  { %s515_s8 = smov 0   ;;  %s517_s9 = smov 0  }
   0x5 LB: > { %s532_s10 = sadd.s32 4294967295, %s493_s9   ;;  %s298_s11 = sadd.s32 4294967294, %s493_s9   ;;  %s493_s9 = sphi %s517_s9, %s695_s9   ;;  %s489_s8 = sphi %s515_s8, %s694_s8   ;;  %s485_s7 = sphi %s513_s7, %s693_s7   ;;  %s481_s6 = sphi %s511_s6, %s692_s6  }
   0x6   : > { %s536_s12 = sadd.s32 1, %s493_s9   ;;  %s24_s13 = sadd.s32 1, %s489_s8 }
   0x7   : > { %s21_s14 = ssub.s32 %s493_s9, %s536_s12  ;;  %p31_p0 = scmp.ne.s32.totalorder %s489_s8, %s485_s7 }
   0x8   : > { %p22_p1 = scmp.eq.s32.totalorder %s21_s14, 0  ;;  %p32_p2 = scmp.eq.s32.totalorder %s493_s9, 0 }
   0x9   : > { %p37_p3 = scmp.ne.s32.totalorder %s485_s7, %s481_s6  ;;  %p38_p4 = scmp.eq.s32.totalorder %s532_s10, 0 }
   0xa   : > { %s548_s15 = scalar_select %p22_p1, %s489_s8, %s24_s13  }
   0xb   : > { %p33_p5 = por %p32_p2, %p31_p0  ;;  %p550_p6 = por %p38_p4, %p37_p3 }
   0xc   : > { %p61_p7 = scmp.eq.s32.totalorder %s532_s10, 3  ;;  %p67_p8 = scmp.eq.s32.totalorder %s298_s11, 3 }
   0xd   : > { %p300_p11 = scmp.ge.s32.totalorder %s493_s9, 4 }
   0xe   : > { %p555_p9 = por %p61_p7, %p31_p0  ;;  %p559_p10 = por %p67_p8, %p37_p3 }
   0xf   : > { %83 = sbr.rel (%p300_p11) target bundleno = 56 (0x38), region = 16 }
  0x14   : > { %86 = sbr.rel (!%p33_p5) target bundleno = 56 (0x38), region = 20  ;;  %s87_s19 = sand.u32 (%p33_p5), 1, %s489_s8  }
  0x15   : > { %s302_s20 = sshll.u32 (%p33_p5), %s493_s9, 1  ;;  %s301_s21 = sshll.u32 (%p33_p5), %s87_s19, 5 }
  0x16   : > { %s93_s22 = ssub.s32 (%p33_p5), 7, %s302_s20  ;;  %s569_s26 = scalar_lea.sflag (%p33_p5), [#allocation3], %s87_s19 }
  0x17   : > { %p94_p12 = scmp.lt.s32.totalorder (%p33_p5), %s93_s22, 2  ;;  %s91_s27 = scalar_lea.vmem (%p33_p5), [#allocation2], %s301_s21 }
  0x19   : > { %s697_s22 = smov (!%p94_p12, %s93_s22), 2 }
  0x1a   : > { %s324_s23 = sshll.u32 %s697_s22, 4 }
  0x1b   : > { %s98_s24 = ssub.s32 32, %s324_s23 }
  0x1c   : > { %s99_s25 = sshll.u32 %s98_s24, 4 }
  0x1d   : > { %100 = vsyncadd %s569_s26, %s99_s25  ;;  %p572_p13 = scmp.ne.s32.totalorder %s324_s23, 0  ;;  %s326_s29 = sshll.u32 %s493_s9, 5 }
  0x1e   : > { %s104_s3 = scalar_lea.hbm %s685_s0, %s326_s29  ;;  %s580_s4 = sshll.u32 %s91_s27, 4  ;;  %s109_s4 = int_to_ptr.vmem [resolvable:$true] %s580_s4 }
  0x1f   : > { %s106_s5 = sshll.u32 %s104_s3, 4  ;;  %s309_s11 = sshll.u32 %s697_s22, 8  ;;  %s583_s5 = int_to_ptr.hbm [resolvable:$true] %s106_s5 }
  0x20   : > { %s377_s13 = sshra.s32 %s583_s5, 4  ;;  %s379_s14 = sshrl.u32 %s309_s11, 4  ;;  %s378_s13 = int_to_ptr.hbm [resolvable:$true] %s377_s13 }
  0x21   : > { %s384_s19 = scalar_lea.hbm %s378_s13, %s379_s14  ;;  %s388_s23 = scalar_lea.hbm %s685_s0, 112 }
  0x22   : > { %p385_p0 = scmp.ne.s32.totalorder %s378_s13, %s384_s19  ;;  %p389_p3 = scmp.lt.s32.totalorder %s378_s13, %s685_s0 }
  0x23   : > { %p390_p4 = scmp.lt.s32.totalorder %s388_s23, %s384_s19 }
  0x24   : > { %p386_p1 = pnand %p385_p0, %p572_p13 }
  0x25   : > { %p391_p5 = por %p390_p4, %p389_p3 }
  0x26   : > { %p387_p2 = pneg %p386_p1 }
  0x28   : > { %p392_p7 = pnand %p391_p5, %p387_p2 }
  0x2a   : > { %395 = shalt.err (!%p392_p7)
}
  0x2b   : > { %s396_s27 = sshra.s32 %s109_s4, 4  ;;  %s495_s30 = smov [#allocation2]   ;;  %s397_s27 = int_to_ptr.vmem [resolvable:$true] %s396_s27 }
  0x2c   : > { %s403_s29 = scalar_lea.vmem %s397_s27, %s379_s14  ;;  %s407_s2 = scalar_lea.vmem %s495_s30, 64 }
  0x2d   : > { %p404_p8 = scmp.ne.s32.totalorder %s397_s27, %s403_s29  ;;  %p409_p0 = scmp.lt.s32.totalorder %s407_s2, %s403_s29 }
  0x2f   : > { %p405_p11 = pnand %p404_p8, %p572_p13 }
  0x31   : > { %p406_p12 = pneg %p405_p11 }
  0x33   : > { %p411_p1 = pnand %p409_p0, %p406_p12 }
  0x35   : > { %414 = shalt.err (!%p411_p1)
}
  0x36   : > { %s496_s3 = smov 256   ;;  %s497_s13 = smov 16  }
  0x37   : > { %114 = dma.hbm_to_vmem [thread:$0]  (%p572_p13), %s583_s5, %s309_s11, %s109_s4, %s569_s26, %s496_s3, %s496_s3, %s497_s13  }
  0x38 PF: > { %p310_p2 = scmp.ge.s32.totalorder %s493_s9, 1  ;;  %p116_p3 = scmp.lt.s32.totalorder %s493_s9, 5 }
  0x3a   : > { %p117_p4 = pnand %p310_p2, %p116_p3 }
  0x3b   : > { %s612_s14 = sand.u32 (!%p117_p4), 1, %s485_s7  }
  0x3c   : > { %120 = sbr.rel (%p117_p4) target bundleno = 248 (0xf8), region = 24  ;;  %s311_s19 = sshll.u32 (!%p117_p4), %s612_s14, 5 }
  0x3d   : > { %s123_s28 = scalar_lea.sflag (!%p117_p4), [#allocation3], %s612_s14  ;;  %s126_s22 = scalar_lea.vmem (!%p117_p4), [#allocation2], %s311_s19 }
  0x41   : > { %472 = dma.done.wait (%p550_p6), %s123_s28, 512  }
  0x42   : > { %474 = vsyncadd (%p550_p6), %s123_s28, 4294966784  ;;  %v158_v0 = vld [vmem:[%s126_s22] sm:$0xff]  ;;  %v159_v1 = vld [vmem:[%s126_s22 + $0x8] sm:$0xff]  ;;  %s145_s16 = scalar_lea.vmem [#allocation5], %s311_s19  ;;  %s201_s26 = scalar_lea.sflag [#allocation4], %s612_s14 }
  0x43   : > { %v162_v2 = vmul.f32 %v158_v0, %v158_v0  ;;  %v163_v3 = vmul.f32 %v159_v1, %v159_v1  ;;  %v160_v4 = vld [vmem:[%s126_s22 + $0x10] sm:$0xff]  ;;  %v161_v5 = vld [vmem:[%s126_s22 + $0x18] sm:$0xff]  ;;  %s314_s4 = sshll.u32 (%p555_p9), %s532_s10, 1 }
  0x44   : > { %v164_v7 = vmul.f32 %v160_v4, %v160_v4  ;;  %v165_v8 = vmul.f32 %v161_v5, %v161_v5  ;;  %s209_s5 = ssub.s32 (%p555_p9), 7, %s314_s4 }
  0x45   : > { %v166_v6 = vadd.f32 %v163_v3, %v162_v2  ;;  %p210_p6 = scmp.lt.s32.totalorder (%p555_p9), %s209_s5, 2 }
  0x46   : > { %v169_v9 = vadd.f32 %v165_v8, %v164_v7 }
  0x47   : > { %167 = vadd.xlane.f32.xlu0 %v166_v6 }
  0x4f   : > { %170 = vadd.xlane.f32.xlu0 %v169_v9 }
  0xba   : > { %v168_v10 = vpop.xlane.xlu0 %167 }
  0xbb   : > { %373 = vrsqrt.f32 %v168_v10  ;;  %vm178_vm1 = vweird.f32 %v168_v10 }
  0xc1   : > { %v374_v11 = vpop.eup %373 }
  0xc2   : > { %v173_v12 = vmul.f32 %v374_v11, %v168_v10  ;;  %v171_v13 = vpop.xlane.xlu0 %170  ;;  %vm179_vm0 = vweird.f32 %v374_v11 }
  0xc3   : > { %375 = vrsqrt.f32 %v171_v13  ;;  %vm180_vm2 = vmor %vm178_vm1, %vm179_vm0  ;;  %vm188_vm4 = vweird.f32 %v171_v13 }
  0xc4   : > { %v174_v14 = vmul.f32 %v374_v11, %v173_v12 }
  0xc6   : > { %v175_v15 = vmul.f32 0.5, %v174_v14 }
  0xc8   : > { %v176_v16 = vsub.f32 1.5, %v175_v15 }
  0xc9   : > { %v376_v17 = vpop.eup %375 }
  0xca   : > { %v177_v18 = vmul.f32 %v374_v11, %v176_v16  ;;  %v183_v19 = vmul.f32 %v376_v17, %v171_v13  ;;  %vm189_vm3 = vweird.f32 %v376_v17 }
  0xcb   : > { %vm190_vm5 = vmor %vm188_vm4, %vm189_vm3 }
  0xcc   : > { %v181_v20 = vsel %vm180_vm2, %v374_v11, %v177_v18  ;;  %v184_v21 = vmul.f32 %v376_v17, %v183_v19 }
  0xcd   : > { %v192_v22 = vmul.f32 %v181_v20, %v158_v0  ;;  %v193_v23 = vmul.f32 %v181_v20, %v159_v1 }
  0xce   : > { %v185_v24 = vmul.f32 0.5, %v184_v21 }
  0xcf   : > { %196 = vst [vmem:[%s145_s16] sm:$0xff] %v192_v22 }
  0xd0   : > { %197 = vst [vmem:[%s145_s16 + $0x8] sm:$0xff] %v193_v23  ;;  %v186_v25 = vsub.f32 1.5, %v185_v24 }
  0xd2   : > { %v187_v26 = vmul.f32 %v376_v17, %v186_v25 }
  0xd4   : > { %v191_v27 = vsel %vm190_vm5, %v376_v17, %v187_v26  ;;  %207 = sbr.rel (!%p555_p9) target bundleno = 248 (0xf8), region = 32 }
  0xd5   : > { %v194_v28 = vmul.f32 %v191_v27, %v160_v4  ;;  %v195_v29 = vmul.f32 %v191_v27, %v161_v5 }
  0xd7   : > { %198 = vst [vmem:[%s145_s16 + $0x10] sm:$0xff] %v194_v28 }
  0xd8   : > { %199 = vst [vmem:[%s145_s16 + $0x18] sm:$0xff] %v195_v29 }
  0xd9   : > { %s699_s5 = smov (!%p210_p6, %s209_s5), 2 }
  0xda   : > { %s327_s11 = sshll.u32 %s699_s5, 4 }
  0xdb   : > { %s214_s20 = ssub.s32 32, %s327_s11 }
  0xdc   : > { %s215_s21 = sshll.u32 %s214_s20, 4 }
  0xdd   : > { %216 = vsyncadd %s201_s26, %s215_s21  ;;  %p633_p13 = scmp.ne.s32.totalorder %s327_s11, 0  ;;  %s329_s17 = sshll.u32 %s532_s10, 5 }
  0xde   : > { %s220_s27 = scalar_lea.hbm %s686_s1, %s329_s17  ;;  %s222_s29 = sshll.u32 %s145_s16, 4  ;;  %s641_s29 = int_to_ptr.vmem [resolvable:$true] %s222_s29 }
  0xdf   : > { %s224_s30 = sshll.u32 %s220_s27, 4  ;;  %s321_s2 = sshll.u32 %s699_s5, 8  ;;  %s643_s30 = int_to_ptr.hbm [resolvable:$true] %s224_s30 }
  0xe0   : > { %s416_s3 = sshra.s32 %s641_s29, 4  ;;  %s418_s13 = sshrl.u32 %s321_s2, 4  ;;  %s417_s3 = int_to_ptr.vmem [resolvable:$true] %s416_s3 }
  0xe1   : > { %s423_s19 = scalar_lea.vmem %s417_s3, %s418_s13  ;;  %s498_s10 = smov [#allocation5]  }
  0xe2   : > { %p424_p9 = scmp.ne.s32.totalorder %s417_s3, %s423_s19  ;;  %s427_s28 = scalar_lea.vmem %s498_s10, 64 }
  0xe3   : > { %p429_p8 = scmp.lt.s32.totalorder %s427_s28, %s423_s19 }
  0xe4   : > { %p425_p5 = pnand %p424_p9, %p633_p13 }
  0xe6   : > { %p426_p7 = pneg %p425_p5 }
  0xe8   : > { %p431_p11 = pnand %p429_p8, %p426_p7 }
  0xea   : > { %434 = shalt.err (!%p431_p11)
}
  0xeb   : > { %s435_s22 = sshra.s32 %s643_s30, 4  ;;  %s446_s20 = scalar_lea.hbm %s686_s1, 112  ;;  %s436_s22 = int_to_ptr.hbm [resolvable:$true] %s435_s22 }
  0xec   : > { %s442_s16 = scalar_lea.hbm %s436_s22, %s418_s13  ;;  %p447_p2 = scmp.lt.s32.totalorder %s436_s22, %s686_s1 }
  0xed   : > { %p443_p12 = scmp.ne.s32.totalorder %s436_s22, %s442_s16  ;;  %p448_p3 = scmp.lt.s32.totalorder %s446_s20, %s442_s16 }
  0xef   : > { %p444_p0 = pnand %p443_p12, %p633_p13  ;;  %p449_p4 = por %p448_p3, %p447_p2 }
  0xf1   : > { %p445_p1 = pneg %p444_p0 }
  0xf3   : > { %p450_p6 = pnand %p449_p4, %p445_p1 }
  0xf5   : > { %453 = shalt.err (!%p450_p6)
}
  0xf6   : > { %s499_s24 = smov 256   ;;  %s500_s25 = smov 16  }
  0xf7   : > { %230 = dma.vmem_to_hbm [thread:$0]  (%p633_p13), %s641_s29, %s321_s2, %s643_s30, %s201_s26, %s499_s24, %s499_s24, %s500_s25  }
  0xf8 PF: > { %p336_p9 = scmp.ge.s32.totalorder %s493_s9, 2  ;;  %s239_s27 = sand.u32 1, %s481_s6  }
  0xf9   : > { %s240_s3 = scalar_lea.sflag [#allocation4], %s239_s27 }
  0xfa   : > { %p333_p5 = pnand %p336_p9, %p559_p10 }
  0xfc   : > { %p334_p7 = pneg %p333_p5 }
  0xfe   : > { %476 = dma.done.wait (%p334_p7), %s240_s3, 512  }
  0xff   : > { %478 = vsyncadd (%p334_p7), %s240_s3, 4294966784  ;;  %p14_p8 = scmp.ge.s32.totalorder %s536_s12, 6   ;;  %s692_s6 = smov %s485_s7 }
 0x100   : > { %s693_s7 = smov %s489_s8  ;;  %s694_s8 = smov %s548_s15 }
 0x101   : > { %s695_s9 = smov %s536_s12  ;;  %16 = sbr.rel (!%p14_p8) target bundleno = 5 (0x5), region = 69 }
 0x106   :  { %246 = vsyncpa [#allocation3], 1 }
 0x107   :  { %248 = vsyncpa [#allocation3 + $0x1], 1 }
 0x108   :  { %249 = vsyncpa [#allocation4], 1 }
 0x109   :  { %251 = vsyncpa [#allocation4 + $0x1], 1 }

</bundles_post_ra>
